<compile_context>
chip_gen: v7x
topology: tpu7x:2x2x1
jax: 0.10.0
libtpu: 0.0.40
codegen_flags: <defaults>
</compile_context>

<pallas_src>
import functools

import jax
import jax.numpy as jnp
from jax.experimental import pallas as pl
from jax.experimental.pallas import tpu as pltpu

HIDDEN = 256


def _round_up(x: int, m: int) -> int:
    return ((x + m - 1) // m) * m


def actor_kernel(x_ref, w1_ref, b1_ref, w2_ref, b2_ref, w3_ref, b3_ref, o_ref,
                 *, max_action):
    # Layer 1: Linear + ReLU  (bf16 operands, f32 MXU accumulation)
    x = x_ref[...].astype(jnp.bfloat16)
    h1 = jnp.dot(x, w1_ref[...], preferred_element_type=jnp.float32)
    h1 = jnp.maximum(h1 + b1_ref[...], 0.0)
    # Layer 2: Linear + ReLU
    h2 = jnp.dot(h1.astype(jnp.bfloat16), w2_ref[...],
                 preferred_element_type=jnp.float32)
    h2 = jnp.maximum(h2 + b2_ref[...], 0.0)
    # Layer 3: Linear + max_action * tanh   (tanh -> EUP, overlaps with MXU)
    h3 = jnp.dot(h2.astype(jnp.bfloat16), w3_ref[...],
                 preferred_element_type=jnp.float32)
    o_ref[...] = (max_action * jnp.tanh(h3 + b3_ref[...])).astype(o_ref.dtype)


@functools.partial(jax.jit,
                   static_argnames=("action_dim", "max_action", "block_m"))
def actor_forward(state, params, *, action_dim, max_action, block_m=1024):
    """state: [B, state_dim] f32. Returns [B, action_dim] f32.

    params: (w1, b1, w2, b2, w3, b3) — weights [in, out] bf16 (w3 already
    padded to a lane-aligned output width), biases [1, out] f32.
    """
    w1, b1, w2, b2, w3, b3 = params
    B, state_dim = state.shape
    a_pad = w3.shape[1]          # padded (multiple of 128) at init time

    # Batch tile: sublane-aligned (multiple of 8), capped at block_m.
    tm = min(block_m, _round_up(B, 8))
    b_pad = _round_up(B, tm)
    if b_pad != B:
        state = jnp.pad(state, ((0, b_pad - B), (0, 0)))
    grid = (b_pad // tm,)

    # Constant index_map => VMEM-resident across all grid steps (one DMA).
    resident = lambda arr: pl.BlockSpec(arr.shape, lambda i: (0, 0))

    kernel = functools.partial(actor_kernel, max_action=float(max_action))
    out = pl.pallas_call(
        kernel,
        out_shape=jax.ShapeDtypeStruct((b_pad, a_pad), jnp.float32),
        grid=grid,
        in_specs=[
            pl.BlockSpec((tm, state_dim), lambda i: (i, 0)),  # streamed state
            resident(w1), resident(b1),
            resident(w2), resident(b2),
            resident(w3), resident(b3),
        ],
        out_specs=pl.BlockSpec((tm, a_pad), lambda i: (i, 0)),
        compiler_params=pltpu.CompilerParams(
            dimension_semantics=("parallel",)),               # 2 TCs on v7x
    )(state, w1, b1, w2, b2, w3, b3)

    return out[:B, :action_dim]


def init_params(key, state_dim, action_dim, hidden=HIDDEN):
    """Deterministic init mimicking nn.Linear's U(-1/sqrt(fan_in), 1/sqrt(fan_in)).

    Weights stored as [in, out] (transposed vs PyTorch's [out, in]) in bf16;
    biases as [1, out] in f32.  The last layer's output dim is zero-padded to a
    multiple of 128 once here, so the kernel's output store is lane-dense and
    no per-call padding of parameters is needed.
    """
    ks = jax.random.split(key, 6)

    def linear(kw, kb, fan_in, fan_out, pad_to=None):
        bound = 1.0 / jnp.sqrt(fan_in)
        w = jax.random.uniform(kw, (fan_in, fan_out), jnp.float32, -bound, bound)
        b = jax.random.uniform(kb, (1, fan_out), jnp.float32, -bound, bound)
        if pad_to is not None and pad_to != fan_out:
            w = jnp.pad(w, ((0, 0), (0, pad_to - fan_out)))
            b = jnp.pad(b, ((0, 0), (0, pad_to - fan_out)))
        return w.astype(jnp.bfloat16), b

    a_pad = _round_up(action_dim, 128)
    w1, b1 = linear(ks[0], ks[1], state_dim, hidden)
    w2, b2 = linear(ks[2], ks[3], hidden, hidden)
    w3, b3 = linear(ks[4], ks[5], hidden, action_dim, pad_to=a_pad)
    return (w1, b1, w2, b2, w3, b3)


def actor_forward_ref(state, params, action_dim, max_action):
    """Pure-JAX reference with the same bf16-operand / f32-accumulate recipe."""
    w1, b1, w2, b2, w3, b3 = params
    x = state.astype(jnp.bfloat16)
    h1 = jnp.maximum(
        jnp.dot(x, w1, preferred_element_type=jnp.float32) + b1, 0.0)
    h2 = jnp.maximum(
        jnp.dot(h1.astype(jnp.bfloat16), w2,
                preferred_element_type=jnp.float32) + b2, 0.0)
    h3 = jnp.dot(h2.astype(jnp.bfloat16), w3,
                 preferred_element_type=jnp.float32) + b3
    return (max_action * jnp.tanh(h3))[:, :action_dim]


if __name__ == "__main__":
    key = jax.random.PRNGKey(0)
    k_param, k_state, k_state_big = jax.random.split(key, 3)

    STATE_DIM, ACTION_DIM, MAX_ACTION = 16, 4, 2.0
    params = init_params(k_param, STATE_DIM, ACTION_DIM)

    # Small batch (matches the original module usage, e.g. get_action).
    B = 2
    state = jax.random.normal(k_state, (B, STATE_DIM), jnp.float32)
    out = jax.block_until_ready(
        actor_forward(state, params, action_dim=ACTION_DIM,
                      max_action=MAX_ACTION))
    ref = actor_forward_ref(state, params, ACTION_DIM, MAX_ACTION)
    assert out.shape == (B, ACTION_DIM)
    assert jnp.allclose(out, ref, atol=1e-3, rtol=1e-3), "mismatch (small batch)"

    # Larger batch exercising batch padding + the streamed-tile path.
    B2 = 300
    state2 = jax.random.normal(k_state_big, (B2, STATE_DIM), jnp.float32)
    out2 = jax.block_until_ready(
        actor_forward(state2, params, action_dim=ACTION_DIM,
                      max_action=MAX_ACTION))
    ref2 = actor_forward_ref(state2, params, ACTION_DIM, MAX_ACTION)
    assert out2.shape == (B2, ACTION_DIM)
    assert jnp.allclose(out2, ref2, atol=1e-3, rtol=1e-3), "mismatch (big batch)"

    print("KERNEL_OK")
</pallas_src>

<mosaic_0001>
module attributes {stable_mosaic.version = 11 : i64} {
  func.func @actor_kernel(%arg0: i32, %arg1: memref<8x16xf32, #tpu.memory_space<vmem>>, %arg2: memref<16x256xbf16, #tpu.memory_space<vmem>>, %arg3: memref<1x256xf32, #tpu.memory_space<vmem>>, %arg4: memref<256x256xbf16, #tpu.memory_space<vmem>>, %arg5: memref<1x256xf32, #tpu.memory_space<vmem>>, %arg6: memref<256x128xbf16, #tpu.memory_space<vmem>>, %arg7: memref<1x128xf32, #tpu.memory_space<vmem>>, %arg8: memref<8x128xf32, #tpu.memory_space<vmem>>) attributes {dimension_semantics = [#tpu.dimension_semantics<parallel>], iteration_bounds = array<i64: 1>, scalar_prefetch = 0 : i64, scratch_operands = 0 : i64, tpu.core_type = #tpu.core_type<tc>, window_params = [{transform_indices = @transform_0, window_bounds = array<i64: 8, 16>}, {pipeline_mode = #tpu.pipeline_mode<synchronous>, transform_indices = @transform_1, window_bounds = array<i64: 16, 256>}, {pipeline_mode = #tpu.pipeline_mode<synchronous>, transform_indices = @transform_2, window_bounds = array<i64: 1, 256>}, {pipeline_mode = #tpu.pipeline_mode<synchronous>, transform_indices = @transform_3, window_bounds = array<i64: 256, 256>}, {pipeline_mode = #tpu.pipeline_mode<synchronous>, transform_indices = @transform_4, window_bounds = array<i64: 1, 256>}, {pipeline_mode = #tpu.pipeline_mode<synchronous>, transform_indices = @transform_5, window_bounds = array<i64: 256, 128>}, {pipeline_mode = #tpu.pipeline_mode<synchronous>, transform_indices = @transform_6, window_bounds = array<i64: 1, 128>}, {transform_indices = @transform_7, window_bounds = array<i64: 8, 128>}]} {
    %c0 = arith.constant 0 : index
    %c0_0 = arith.constant 0 : index
    %0 = vector.load %arg1[%c0, %c0_0] : memref<8x16xf32, #tpu.memory_space<vmem>>, vector<8x16xf32>
    %1 = arith.truncf %0 : vector<8x16xf32> to vector<8x16xbf16>
    %c0_1 = arith.constant 0 : index
    %c0_2 = arith.constant 0 : index
    %2 = vector.load %arg2[%c0_1, %c0_2] : memref<16x256xbf16, #tpu.memory_space<vmem>>, vector<16x256xbf16>
    %cst = arith.constant dense<0.000000e+00> : vector<8x256xf32>
    %3 = tpu.matmul %1, %2, %cst {dimension_numbers = #tpu.dot_dimension_numbers<[1], [0], [0], [1], [0, 0, 1, 1], [], []>} : vector<8x16xbf16>, vector<16x256xbf16>, vector<8x256xf32> -> vector<8x256xf32>
    %c0_3 = arith.constant 0 : index
    %c0_4 = arith.constant 0 : index
    %4 = vector.load %arg3[%c0_3, %c0_4] : memref<1x256xf32, #tpu.memory_space<vmem>>, vector<1x256xf32>
    %5 = vector.broadcast %4 : vector<1x256xf32> to vector<8x256xf32>
    %6 = arith.addf %3, %5 : vector<8x256xf32>
    %cst_5 = arith.constant 0.000000e+00 : f32
    %7 = vector.broadcast %cst_5 : f32 to vector<8x256xf32>
    %8 = arith.maximumf %6, %7 : vector<8x256xf32>
    %9 = arith.truncf %8 : vector<8x256xf32> to vector<8x256xbf16>
    %c0_6 = arith.constant 0 : index
    %c0_7 = arith.constant 0 : index
    %10 = vector.load %arg4[%c0_6, %c0_7] : memref<256x256xbf16, #tpu.memory_space<vmem>>, vector<256x256xbf16>
    %cst_8 = arith.constant dense<0.000000e+00> : vector<8x256xf32>
    %11 = tpu.matmul %9, %10, %cst_8 {dimension_numbers = #tpu.dot_dimension_numbers<[1], [0], [0], [1], [0, 0, 1, 1], [], []>} : vector<8x256xbf16>, vector<256x256xbf16>, vector<8x256xf32> -> vector<8x256xf32>
    %c0_9 = arith.constant 0 : index
    %c0_10 = arith.constant 0 : index
    %12 = vector.load %arg5[%c0_9, %c0_10] : memref<1x256xf32, #tpu.memory_space<vmem>>, vector<1x256xf32>
    %13 = vector.broadcast %12 : vector<1x256xf32> to vector<8x256xf32>
    %14 = arith.addf %11, %13 : vector<8x256xf32>
    %cst_11 = arith.constant 0.000000e+00 : f32
    %15 = vector.broadcast %cst_11 : f32 to vector<8x256xf32>
    %16 = arith.maximumf %14, %15 : vector<8x256xf32>
    %17 = arith.truncf %16 : vector<8x256xf32> to vector<8x256xbf16>
    %c0_12 = arith.constant 0 : index
    %c0_13 = arith.constant 0 : index
    %18 = vector.load %arg6[%c0_12, %c0_13] : memref<256x128xbf16, #tpu.memory_space<vmem>>, vector<256x128xbf16>
    %cst_14 = arith.constant dense<0.000000e+00> : vector<8x128xf32>
    %19 = tpu.matmul %17, %18, %cst_14 {dimension_numbers = #tpu.dot_dimension_numbers<[1], [0], [0], [1], [0, 0, 1, 1], [], []>} : vector<8x256xbf16>, vector<256x128xbf16>, vector<8x128xf32> -> vector<8x128xf32>
    %c0_15 = arith.constant 0 : index
    %c0_16 = arith.constant 0 : index
    %20 = vector.load %arg7[%c0_15, %c0_16] : memref<1x128xf32, #tpu.memory_space<vmem>>, vector<1x128xf32>
    %21 = vector.broadcast %20 : vector<1x128xf32> to vector<8x128xf32>
    %22 = arith.addf %19, %21 : vector<8x128xf32>
    %23 = math.tanh %22 : vector<8x128xf32>
    %cst_17 = arith.constant 2.000000e+00 : f32
    %24 = vector.broadcast %cst_17 : f32 to vector<8x128xf32>
    %25 = arith.mulf %24, %23 : vector<8x128xf32>
    %c0_18 = arith.constant 0 : index
    %c0_19 = arith.constant 0 : index
    %26 = vector.load %arg8[%c0_18, %c0_19] : memref<8x128xf32, #tpu.memory_space<vmem>>, vector<8x128xf32>
    tpu.vector_store %arg8[%c0_18, %c0_19], %25 {strides = array<i32>} : memref<8x128xf32, #tpu.memory_space<vmem>>, vector<8x128xf32>,
    return
  }
  func.func @transform_0(%arg0: i32) -> (i32, i32) {
    %c0_i32 = arith.constant 0 : i32
    %c0_i32_0 = arith.constant 0 : i32
    return %arg0, %c0_i32 : i32, i32
  }
  func.func @transform_1(%arg0: i32) -> (i32, i32) {
    %c0_i32 = arith.constant 0 : i32
    %c0_i32_0 = arith.constant 0 : i32
    %c0_i32_1 = arith.constant 0 : i32
    return %c0_i32, %c0_i32_0 : i32, i32
  }
  func.func @transform_2(%arg0: i32) -> (i32, i32) {
    %c0_i32 = arith.constant 0 : i32
    %c0_i32_0 = arith.constant 0 : i32
    %c0_i32_1 = arith.constant 0 : i32
    return %c0_i32, %c0_i32_0 : i32, i32
  }
  func.func @transform_3(%arg0: i32) -> (i32, i32) {
    %c0_i32 = arith.constant 0 : i32
    %c0_i32_0 = arith.constant 0 : i32
    %c0_i32_1 = arith.constant 0 : i32
    return %c0_i32, %c0_i32_0 : i32, i32
  }
  func.func @transform_4(%arg0: i32) -> (i32, i32) {
    %c0_i32 = arith.constant 0 : i32
    %c0_i32_0 = arith.constant 0 : i32
    %c0_i32_1 = arith.constant 0 : i32
    return %c0_i32, %c0_i32_0 : i32, i32
  }
  func.func @transform_5(%arg0: i32) -> (i32, i32) {
    %c0_i32 = arith.constant 0 : i32
    %c0_i32_0 = arith.constant 0 : i32
    %c0_i32_1 = arith.constant 0 : i32
    return %c0_i32, %c0_i32_0 : i32, i32
  }
  func.func @transform_6(%arg0: i32) -> (i32, i32) {
    %c0_i32 = arith.constant 0 : i32
    %c0_i32_0 = arith.constant 0 : i32
    %c0_i32_1 = arith.constant 0 : i32
    return %c0_i32, %c0_i32_0 : i32, i32
  }
  func.func @transform_7(%arg0: i32) -> (i32, i32) {
    %c0_i32 = arith.constant 0 : i32
    %c0_i32_0 = arith.constant 0 : i32
    return %arg0, %c0_i32 : i32, i32
  }
}

</mosaic_0001>

<bundles_post_ra>
// kernel: actor_forward.1
= control target key start
LH: loop header
LB: loop body
LE: loop exit
PB: predicated region body
PF: predicated region fallthrough
CT: control target
= control target key end

     0   :  { %12 = vsyncpa [#allocation3], 0  ;;  %s903_s0 = inlined_call_operand.vmem [shape: f32[8,16], index: 0, kind: input, shape index: {}]   ;;  %s904_s1 = inlined_call_operand.hbm [shape: bf16[16,256], index: 1, kind: input, shape index: {}]   ;;  %s905_s2 = inlined_call_operand.vmem [shape: f32[1,256], index: 2, kind: input, shape index: {}]   ;;  %s906_s3 = inlined_call_operand.hbm [shape: bf16[256,256], index: 3, kind: input, shape index: {}]   ;;  %s907_s4 = inlined_call_operand.vmem [shape: f32[1,256], index: 4, kind: input, shape index: {}]   ;;  %s908_s5 = inlined_call_operand.hbm [shape: bf16[256,128], index: 5, kind: input, shape index: {}]   ;;  %s909_s6 = inlined_call_operand.vmem [shape: f32[1,128], index: 6, kind: input, shape index: {}]   ;;  %s910_s7 = inlined_call_operand.vmem [shape: f32[8,128], index: 7, kind: output, shape index: {}]  }
   0x1   :  { %13 = vsyncpa [#allocation5], 0  ;;  %s797_s24 = smov [#allocation4]   ;;  %s798_s26 = smov [#allocation2]  }
   0x2   :  { %s35_s25 = sshll.u32 %s797_s24, 4  ;;  %s21_s27 = sshll.u32 %s798_s26, 4  ;;  %s36_s25 = int_to_ptr.vmem [resolvable:$true] %s35_s25  ;;  %s845_s27 = int_to_ptr.vmem [resolvable:$true] %s21_s27 }
   0x3   :  { %s727_s30 = scalar_lea.hbm %s906_s3, 4096 }
   0x4   :  { %p728_p0 = scmp.ne.s32.totalorder %s906_s3, %s727_s30  ;;  %p731_p1 = scmp.lt.u32.totalorder %s727_s30, %s906_s3 }
   0x6   :  { %p733_p2 = pnand %p731_p1, %p728_p0 }
   0x8   :  { %736 = shalt.err (!%p733_p2)
}
   0x9   :  { %s737_s12 = scalar_lea.vmem %s36_s25, 4096  ;;  %p742_p4 = scmp.lt.s32.totalorder %s36_s25, %s36_s25 }
   0xa   :  { %p738_p3 = scmp.ne.s32.totalorder %s36_s25, %s737_s12  ;;  %p743_p5 = scmp.lt.s32.totalorder %s737_s12, %s737_s12 }
   0xc   :  { %p744_p6 = por %p743_p5, %p742_p4 }
   0xe   :  { %p745_p7 = pnand %p744_p6, %p738_p3 }
  0x10   :  { %748 = shalt.err (!%p745_p7)
}
  0x11   :  { %s799_s13 = smov 128   ;;  %s800_s14 = smov 8  }
  0x12   :  { %41 = dma.hbm_to_vmem [thread:$0]  %s906_s3, 4096, %s36_s25, [#allocation5], %s799_s13, %s799_s13, %s800_s14  }
  0x13   :  { %s749_s19 = scalar_lea.hbm %s904_s1, 256 }
  0x14   :  { %p750_p8 = scmp.ne.s32.totalorder %s904_s1, %s749_s19  ;;  %p753_p9 = scmp.lt.u32.totalorder %s749_s19, %s904_s1 }
  0x16   :  { %p755_p10 = pnand %p753_p9, %p750_p8 }
  0x18   :  { %758 = shalt.err (!%p755_p10)
}
  0x19   :  { %s759_s24 = scalar_lea.vmem %s845_s27, 256  ;;  %p764_p12 = scmp.lt.s32.totalorder %s845_s27, %s845_s27 }
  0x1a   :  { %p760_p11 = scmp.ne.s32.totalorder %s845_s27, %s759_s24  ;;  %p765_p13 = scmp.lt.s32.totalorder %s759_s24, %s759_s24 }
  0x1c   :  { %p766_p0 = por %p765_p13, %p764_p12 }
  0x1e   :  { %p767_p1 = pnand %p766_p0, %p760_p11 }
  0x20   :  { %770 = shalt.err (!%p767_p1)
}
  0x21   :  { %27 = dma.hbm_to_vmem [thread:$0]  %s904_s1, 256, %s845_s27, [#allocation3], %s799_s13, %s799_s13, %s800_s14  }
  0x22   :  { %s801_s26 = smov [#allocation6]   ;;  %s771_s8 = scalar_lea.hbm %s908_s5, 2048 }
  0x23   :  { %s49_s28 = sshll.u32 %s801_s26, 4  ;;  %p772_p2 = scmp.ne.s32.totalorder %s908_s5, %s771_s8  ;;  %s50_s28 = int_to_ptr.vmem [resolvable:$true] %s49_s28 }
  0x24   :  { %p775_p3 = scmp.lt.u32.totalorder %s771_s8, %s908_s5 }
  0x26   :  { %p777_p4 = pnand %p775_p3, %p772_p2 }
  0x28   :  { %780 = shalt.err (!%p777_p4)
}
  0x29   :  { %s781_s15 = scalar_lea.vmem %s50_s28, 2048  ;;  %p786_p6 = scmp.lt.s32.totalorder %s50_s28, %s50_s28 }
  0x2a   :  { %p782_p5 = scmp.ne.s32.totalorder %s50_s28, %s781_s15  ;;  %p787_p7 = scmp.lt.s32.totalorder %s781_s15, %s781_s15 }
  0x2c   :  { %p788_p8 = por %p787_p7, %p786_p6 }
  0x2e   :  { %p789_p9 = pnand %p788_p8, %p782_p5 }
  0x30   :  { %792 = shalt.err (!%p789_p9)
}
  0x31   :  { %s802_s1 = smov 64   ;;  %s803_s27 = smov 4  }
  0x32   :  { %55 = dma.hbm_to_vmem [thread:$0]  %s908_s5, 2048, %s50_s28, [#allocation5], %s802_s1, %s802_s1, %s803_s27  }
  0x33   :  { %793 = dma.done.wait [#allocation3], 256  }
  0x34   :  { %794 = vsyncadd [#allocation3], 4294967040 }
  0x35   :  { %795 = dma.done.wait [#allocation5], 6144  }
  0x36   :  { %796 = vsyncadd [#allocation5], 4294961152  ;;  %v804_v0 = vmov 0   ;;  %v658_v1 = vld [vmem:[#allocation2 + $0x4] ss:$8 sps:$4 sm:$0xff]   ;;  %vm94_vm0 = vcmask 130048   ;;  %v74_v49 = vlaneseq }
  0x37   :  { %130 = vmatprep.mubr.bf16.mxu0 %v804_v0  ;;  %v660_v2 = vld [vmem:[#allocation2] ss:$8 sps:$4 sm:$0xff]   ;;  %98 = vmatprep.subr.bf16.mxu0 %v658_v1  ;;  %v661_v5 = vld [vmem:[#allocation4 + $0x4] ss:$8 sps:$4 sm:$0xff]   ;;  %v663_v6 = vld [vmem:[#allocation4] ss:$8 sps:$4 sm:$0xff]  }
  0x38   :  { %v68_v3 = vld [vmem:[%s903_s0] sm:$0xff]  ;;  %99 = vmatpush1.bf16.msra.mxu0 %v660_v2  ;;  %347 = vmatprep.subr.bf16.mxu1 %v661_v5  ;;  %v667_v9 = vld [vmem:[#allocation4 + $0x24] ss:$8 sps:$4 sm:$0xff]   ;;  %v669_v10 = vld [vmem:[#allocation4 + $0x20] ss:$8 sps:$4 sm:$0xff]   ;;  %v75_v50 = vshrl.u32 %v74_v49, 7 }
  0x39   :  { %v69_v4 = vpack.c.bf16 %v68_v3, %v68_v3  ;;  %v664_v7 = vld [vmem:[#allocation4 + $0x14] ss:$8 sps:$4 sm:$0xff]   ;;  %348 = vmatpush1.bf16.msra.mxu1 %v663_v6  ;;  %v666_v8 = vld [vmem:[#allocation4 + $0x10] ss:$8 sps:$4 sm:$0xff]   ;;  %v673_v13 = vld [vmem:[#allocation4 + $0x44] ss:$8 sps:$4 sm:$0xff]  }
  0x3a   :  { %349 = vmatprep.subr.bf16.mxu1 %v664_v7  ;;  %v670_v11 = vld [vmem:[#allocation4 + $0x34] ss:$8 sps:$4 sm:$0xff]   ;;  %v672_v12 = vld [vmem:[#allocation4 + $0x30] ss:$8 sps:$4 sm:$0xff]   ;;  %v675_v14 = vld [vmem:[#allocation4 + $0x40] ss:$8 sps:$4 sm:$0xff]  }
  0x3b   :  { %578 = vmatmul.mubr.msk.bf16.vlgmr.msra.gmra.mrb[0].mxu0 %vm94_vm0, %v69_v4  ;;  %v676_v15 = vld [vmem:[#allocation4 + $0x54] ss:$8 sps:$4 sm:$0xff]   ;;  %v678_v16 = vld [vmem:[#allocation4 + $0x50] ss:$8 sps:$4 sm:$0xff]   ;;  %v679_v17 = vld [vmem:[#allocation4 + $0x64] ss:$8 sps:$4 sm:$0xff]  }
  0x3c   :  { %v681_v18 = vld [vmem:[#allocation4 + $0x60] ss:$8 sps:$4 sm:$0xff]   ;;  %v682_v19 = vld [vmem:[#allocation4 + $0x74] ss:$8 sps:$4 sm:$0xff]   ;;  %v684_v20 = vld [vmem:[#allocation4 + $0x70] ss:$8 sps:$4 sm:$0xff]  }
  0x3d   :  { %350 = vmatpush1.bf16.msra.mxu1 %v666_v8  ;;  %v685_v21 = vld [vmem:[#allocation4 + $0x84] ss:$8 sps:$4 sm:$0xff]   ;;  %v687_v22 = vld [vmem:[#allocation4 + $0x80] ss:$8 sps:$4 sm:$0xff]   ;;  %v688_v23 = vld [vmem:[#allocation4 + $0x94] ss:$8 sps:$4 sm:$0xff]  }
  0x3e   :  { %351 = vmatprep.subr.bf16.mxu1 %v667_v9  ;;  %v690_v24 = vld [vmem:[#allocation4 + $0x90] ss:$8 sps:$4 sm:$0xff]   ;;  %v691_v25 = vld [vmem:[#allocation4 + $0xa4] ss:$8 sps:$4 sm:$0xff]   ;;  %v693_v26 = vld [vmem:[#allocation4 + $0xa0] ss:$8 sps:$4 sm:$0xff]  }
  0x3f   :  { %v694_v27 = vld [vmem:[#allocation4 + $0xb4] ss:$8 sps:$4 sm:$0xff]   ;;  %v696_v28 = vld [vmem:[#allocation4 + $0xb0] ss:$8 sps:$4 sm:$0xff]   ;;  %v697_v29 = vld [vmem:[#allocation4 + $0xc4] ss:$8 sps:$4 sm:$0xff]  }
  0x40   :  { %v699_v30 = vld [vmem:[#allocation4 + $0xc0] ss:$8 sps:$4 sm:$0xff]   ;;  %v700_v31 = vld [vmem:[#allocation4 + $0xd4] ss:$8 sps:$4 sm:$0xff]   ;;  %v702_v32 = vld [vmem:[#allocation4 + $0xd0] ss:$8 sps:$4 sm:$0xff]  }
  0x41   :  { %352 = vmatpush1.bf16.msra.mxu1 %v669_v10  ;;  %v703_v33 = vld [vmem:[#allocation4 + $0xe4] ss:$8 sps:$4 sm:$0xff]   ;;  %v705_v34 = vld [vmem:[#allocation4 + $0xe0] ss:$8 sps:$4 sm:$0xff]   ;;  %v706_v35 = vld [vmem:[#allocation4 + $0xf4] ss:$8 sps:$4 sm:$0xff]  }
  0x42   :  { %353 = vmatprep.subr.bf16.mxu1 %v670_v11  ;;  %v708_v36 = vld [vmem:[#allocation4 + $0xf0] ss:$8 sps:$4 sm:$0xff]   ;;  %v709_v37 = vld [vmem:[#allocation6 + $0x40] sm:$0xff]   ;;  %v711_v39 = vld [vmem:[#allocation6 + $0x48] sm:$0xff]   ;;  %v76_v51 = vsub.s32 0, %v75_v50  ;;  %v80_v53 = vsub.s32 1, %v75_v50 }
  0x43   :  { %v710_v38 = vld [vmem:[#allocation6] sm:$0xff]   ;;  %628 = vmatprep.subr.bf16.mxu0 %v709_v37  ;;  %v712_v40 = vld [vmem:[#allocation6 + $0x8] sm:$0xff]   ;;  %v713_v41 = vld [vmem:[#allocation6 + $0x50] sm:$0xff]  }
  0x44   :  { %629 = vmatpush3.bf16.msra.mxu0 %v710_v38  ;;  %v714_v42 = vld [vmem:[#allocation6 + $0x10] sm:$0xff]   ;;  %v715_v43 = vld [vmem:[#allocation6 + $0x58] sm:$0xff]   ;;  %v717_v45 = vld [vmem:[#allocation6 + $0x60] sm:$0xff]  }
  0x45   :  { %354 = vmatpush1.bf16.msra.mxu1 %v672_v12  ;;  %630 = vmatprep.subr.bf16.mxu0 %v711_v39  ;;  %v716_v44 = vld [vmem:[#allocation6 + $0x18] sm:$0xff]   ;;  %v718_v46 = vld [vmem:[#allocation6 + $0x20] sm:$0xff]   ;;  %v719_v47 = vld [vmem:[#allocation6 + $0x68] sm:$0xff]  }
  0x46   :  { %355 = vmatprep.subr.bf16.mxu1 %v673_v13  ;;  %v720_v48 = vld [vmem:[#allocation6 + $0x28] sm:$0xff]   ;;  %v72_v52 = vld [vmem:[%s905_s2] sm:$0x3]  ;;  %v723_v4 = vld [vmem:[#allocation6 + $0x78] sm:$0xff]  }
  0x47   :  { %v77_v54 = vrot.slane %v72_v52, %v76_v51  ;;  %v81_v55 = vrot.slane %v72_v52, %v80_v53  ;;  %v721_v2 = vld [vmem:[#allocation6 + $0x70] sm:$0xff]   ;;  %v724_v5 = vld [vmem:[#allocation6 + $0x38] sm:$0xff]  }
  0x48   :  { %631 = vmatpush3.bf16.msra.mxu0 %v712_v40  ;;  %v722_v3 = vld [vmem:[#allocation6 + $0x30] sm:$0xff]  }
  0x49   :  { %356 = vmatpush1.bf16.msra.mxu1 %v675_v14  ;;  %632 = vmatprep.subr.bf16.mxu0 %v713_v41  ;;  %v175_v6 = vld [vmem:[%s907_s4] sm:$0x3] }
  0x4a   :  { %357 = vmatprep.subr.bf16.mxu1 %v676_v15  ;;  %v180_v7 = vrot.slane %v175_v6, %v76_v51  ;;  %v184_v8 = vrot.slane %v175_v6, %v80_v53 }
  0x4c   :  { %633 = vmatpush3.bf16.msra.mxu0 %v714_v42 }
  0x4d   :  { %358 = vmatpush1.bf16.msra.mxu1 %v678_v16  ;;  %634 = vmatprep.subr.bf16.mxu0 %v715_v43 }
  0x4e   :  { %359 = vmatprep.subr.bf16.mxu1 %v679_v17 }
  0x50   :  { %635 = vmatpush3.bf16.msra.mxu0 %v716_v44 }
  0x51   :  { %360 = vmatpush1.bf16.msra.mxu1 %v681_v18  ;;  %636 = vmatprep.subr.bf16.mxu0 %v717_v45 }
  0x52   :  { %361 = vmatprep.subr.bf16.mxu1 %v682_v19 }
  0x54   :  { %637 = vmatpush3.bf16.msra.mxu0 %v718_v46 }
  0x55   :  { %362 = vmatpush1.bf16.msra.mxu1 %v684_v20  ;;  %638 = vmatprep.subr.bf16.mxu0 %v719_v47  ;;  %v611_v20 = vld [vmem:[%s909_s6] ss:$0 sm:$0xff] }
  0x56   :  { %363 = vmatprep.subr.bf16.mxu1 %v685_v21 }
  0x58   :  { %639 = vmatpush3.bf16.msra.mxu0 %v720_v48 }
  0x59   :  { %364 = vmatpush1.bf16.msra.mxu1 %v687_v22  ;;  %640 = vmatprep.subr.bf16.mxu0 %v721_v2 }
  0x5a   :  { %365 = vmatprep.subr.bf16.mxu1 %v688_v23 }
  0x5c   :  { %641 = vmatpush3.bf16.msra.mxu0 %v722_v3 }
  0x5d   :  { %366 = vmatpush1.bf16.msra.mxu1 %v690_v24  ;;  %642 = vmatprep.subr.bf16.mxu0 %v723_v4 }
  0x5e   :  { %367 = vmatprep.subr.bf16.mxu1 %v691_v25 }
  0x60   :  { %643 = vmatpush3.bf16.msra.mxu0 %v724_v5 }
  0x61   :  { %368 = vmatpush1.bf16.msra.mxu1 %v693_v26 }
  0x62   :  { %369 = vmatprep.subr.bf16.mxu1 %v694_v27 }
  0x65   :  { %370 = vmatpush1.bf16.msra.mxu1 %v696_v28 }
  0x66   :  { %371 = vmatprep.subr.bf16.mxu1 %v697_v29 }
  0x69   :  { %372 = vmatpush1.bf16.msra.mxu1 %v699_v30 }
  0x6a   :  { %373 = vmatprep.subr.bf16.mxu1 %v700_v31 }
  0x6d   :  { %374 = vmatpush1.bf16.msra.mxu1 %v702_v32 }
  0x6e   :  { %375 = vmatprep.subr.bf16.mxu1 %v703_v33 }
  0x71   :  { %376 = vmatpush1.bf16.msra.mxu1 %v705_v34 }
  0x72   :  { %377 = vmatprep.subr.bf16.mxu1 %v706_v35 }
  0x75   :  { %378 = vmatpush1.bf16.msra.mxu1 %v708_v36 }
 0x10e   :  { %v132_v56 = vpop.f32.mrb[0].mxu0 }
 0x10f   :  { %v133_v57 = vadd.f32 %v132_v56, %v77_v54  ;;  %v134_v58 = vpop.f32.mrb[1].mxu0 }
 0x110   :  { %v135_v59 = vadd.f32 %v134_v58, %v81_v55  ;;  %v136_v60 = vpop.f32.mrb[2].mxu0 }
 0x111   :  { %v139_v61 = vmax.f32 %v133_v57, 0.0  ;;  %v137_v62 = vpop.f32.mrb[3].mxu0 }
 0x112   :  { %v140_v63 = vmax.f32 %v135_v59, 0.0 }
 0x113   :  { %v141_v1 = vpack.c.bf16 %v139_v61, %v139_v61 }
 0x114   :  { %v142_v0 = vpack.c.bf16 %v140_v63, %v140_v63 }
 0x116   :  { %379 = vmatprep.mubr.bf16.mxu1 %v142_v0 }
 0x117   :  { %380 = vmatmul.mubr.bf16.vlgmr.msra.gmra.mrb[0].mxu1 %v141_v1 }
 0x1ea   :  { %v381_v9 = vpop.f32.mrb[0].mxu1 }
 0x1eb   :  { %v382_v10 = vadd.f32 %v381_v9, %v180_v7  ;;  %v383_v11 = vpop.f32.mrb[1].mxu1 }
 0x1ec   :  { %v384_v12 = vadd.f32 %v383_v11, %v184_v8  ;;  %v385_v13 = vpop.f32.mrb[2].mxu1 }
 0x1ed   :  { %v388_v14 = vmax.f32 %v382_v10, 0.0  ;;  %v386_v15 = vpop.f32.mrb[3].mxu1 }
 0x1ee   :  { %v389_v16 = vmax.f32 %v384_v12, 0.0 }
 0x1ef   :  { %v390_v18 = vpack.c.bf16 %v388_v14, %v388_v14 }
 0x1f0   :  { %v391_v17 = vpack.c.bf16 %v389_v16, %v389_v16 }
 0x1f2   :  { %559 = vmatprep.mubr.bf16.mxu0 %v391_v17 }
 0x1f3   :  { %560 = vmatmul.mubr.bf16.vlgmr.msra.gmra.mrb[4].mxu0 %v390_v18 }
 0x2c6   :  { %v644_v19 = vpop.f32.mrb[4].mxu0 }
 0x2c7   :  { %v645_v21 = vpop.f32.mrb[5].mxu0 }
 0x2c8   :  { %v646_v22 = vadd.f32 %v645_v21, %v644_v19  ;;  %v647_v23 = vpop.f32.mrb[6].mxu0 }
 0x2c9   :  { %v648_v24 = vpop.f32.mrb[7].mxu0 }
 0x2ca   :  { %v562_v25 = vadd.f32 %v646_v22, %v611_v20 }
 0x2cc   :  { %725 = vtanh.f32 %v562_v25 }
 0x2d6   :  { %v726_v26 = vpop.eup %725 }
 0x2d7   :  { %v568_v27 = vmul.f32 2.0, %v726_v26 }
 0x2d9   :  { %569 = vst [vmem:[%s910_s7] sm:$0xff] %v568_v27 }
 0x2da   :  { %574 = vsyncpa [#allocation3], 1 }
 0x2db   :  { %575 = vsyncpa [#allocation5], 1 }

</bundles_post_ra>
